<compile_context>
chip_gen: v6e
topology: v6e:2x2x1
jax: 0.10.0
libtpu: 0.0.40
codegen_flags: <defaults>
</compile_context>

<pallas_src>
import functools

import jax
import jax.numpy as jnp
from jax import lax
from jax.experimental import pallas as pl
from jax.experimental.pallas import tpu as pltpu

_BN_EPS = 1e-5


# ---------------------------------------------------------------------------
# Fused kernel: 1x1 conv + BN + PReLU -> 3x3 depthwise (stride 2, pad 1)
#               + BN + PReLU -> 1x1 conv + BN
# Input x_ref holds the four (row-parity, col-parity) planes side by side on
# the lane axis; inside each plane the lane index is (n, oh, ow).
# ---------------------------------------------------------------------------
def _depthwise_block_kernel(wo, x_ref, pa_ref, pb_ref, brd_ref, o_ref):
    cin = x_ref.shape[0]
    g = pa_ref.shape[0]
    cout = o_ref.shape[0]
    lanes = o_ref.shape[1]              # L = N * Ho * Wo  (one parity plane)

    x = x_ref[...]                      # [Cin, 4*L]
    pa = pa_ref[...]                    # [G, Cin + 9 + 4]
    pb = pb_ref[...]                    # [Cout, G + 1]
    brd = brd_ref[...]                  # [3, L]  multiplicative border keep-masks

    w1 = pa[:, :cin]                    # [G, Cin]   (BN1 scale folded in)
    w2 = pa[:, cin:cin + 9]             # [G, 9]     (BN2 scale folded in)
    b1 = pa[:, cin + 9:cin + 10]        # [G, 1]
    a1 = pa[:, cin + 10:cin + 11]       # [G, 1]
    b2 = pa[:, cin + 11:cin + 12]       # [G, 1]
    a2 = pa[:, cin + 12:cin + 13]       # [G, 1]
    w3 = pb[:, :g]                      # [Cout, G]  (BN3 scale folded in)
    b3 = pb[:, g:g + 1]                 # [Cout, 1]

    # --- Stage 1: 1x1 conv (Cin -> G) + BN + PReLU on all 4 parity planes ---
    # Cin is tiny, so unrolled VPU broadcast-MACs on a [G, 4*L] tile.
    acc1 = w1[:, 0:1] * x[0:1, :]
    for c in range(1, cin):
        acc1 = acc1 + w1[:, c:c + 1] * x[c:c + 1, :]
    y1 = acc1 + b1
    y1 = jnp.where(y1 > 0, y1, a1 * y1)                  # PReLU (per channel)

    # --- Stage 2: depthwise 3x3, stride 2, pad 1 -----------------------------
    # tap t = kh*3 + kw  ->  (parity plane, lane shift, border-mask row)
    #   plane p: lanes [p*L, (p+1)*L) of y1;   shifted tap = y1[:, p*L-s : p*L-s+L]
    #   (the few lanes pulled in from the neighbouring plane are exactly the
    #    pad-1 border positions, which the mask zeroes out).
    taps = (
        (3, wo + 1, 2),   # (kh=0, kw=0): row 2oh-1, col 2ow-1
        (2, wo,     1),   # (0, 1)
        (3, wo,     1),   # (0, 2)
        (1, 1,      0),   # (1, 0)
        (0, 0,   None),   # (1, 1)
        (1, 0,   None),   # (1, 2)
        (3, 1,      0),   # (2, 0)
        (2, 0,   None),   # (2, 1)
        (3, 0,   None),   # (2, 2)
    )
    acc2 = None
    for t, (plane, shift, mrow) in enumerate(taps):
        start = plane * lanes - shift
        v = y1[:, start:start + lanes]                   # shifted plane read
        if mrow is not None:
            v = v * brd[mrow:mrow + 1, :]                # zero the pad-1 border
        term = w2[:, t:t + 1] * v
        acc2 = term if acc2 is None else acc2 + term
    y2 = acc2 + b2
    y2 = jnp.where(y2 > 0, y2, a2 * y2)                  # PReLU (per channel)

    # --- Stage 3: 1x1 conv (G -> Cout) + BN (no activation) ------------------
    acc3 = w3[:, 0:1] * y2[0:1, :]
    for gi in range(1, g):
        acc3 = acc3 + w3[:, gi:gi + 1] * y2[gi:gi + 1, :]
    o_ref[...] = (acc3 + b3).astype(o_ref.dtype)         # lane-dense [Cout, 128]


# ---------------------------------------------------------------------------
# DepthWise forward (wrapper / layout plumbing) — NCHW in, NCHW out, eval BN.
# ---------------------------------------------------------------------------
def depthwise_forward(x_nchw, p, *, stride=2, residual=False):
    N, Cin, H, W = x_nchw.shape
    G = p["w1"].shape[1]
    Cout = p["w3"].shape[1]
    if stride != 2:
        # TODO(synk): stride=(1,1) variant (needed for residual blocks of the
        # backbone) would reuse the same fused body with a dense 9-tap gather.
        raise NotImplementedError("kernel is specialised to the module default stride=(2,2)")
    if H % 2 or W % 2:
        raise NotImplementedError("H and W must be even for the parity-plane layout")
    Ho, Wo = H // 2, W // 2
    L = N * Ho * Wo

    # Fold eval-mode BatchNorm into conv weights (scale) and a shift vector.
    def fold(gm, bt, mn, vr):
        s = gm / jnp.sqrt(vr + _BN_EPS)
        return s, bt - mn * s

    s1, sh1 = fold(p["g1"], p["b1"], p["m1"], p["v1"])
    s2, sh2 = fold(p["g2"], p["b2"], p["m2"], p["v2"])
    s3, sh3 = fold(p["g3"], p["b3"], p["m3"], p["v3"])
    w1s = (p["w1"] * s1[None, :]).T          # [G, Cin]
    w2s = (p["w2"] * s2[None, :]).T          # [G, 9]
    w3s = (p["w3"] * s3[None, :]).T          # [Cout, G]

    # Pack the tiny per-channel operands into two small arrays (fewer DMAs).
    pa = jnp.concatenate(
        [w1s, w2s, sh1[:, None], p["a1"][:, None], sh2[:, None], p["a2"][:, None]],
        axis=1)                                              # [G, Cin + 13]
    pb = jnp.concatenate([w3s, sh3[:, None]], axis=1)        # [Cout, G + 1]

    # Multiplicative keep-masks for the pad-1 border of the shifted taps.
    lane = jnp.arange(L, dtype=jnp.int32)
    keep_w = (lane % Wo != 0).astype(jnp.float32)            # col 2*ow-1 valid
    keep_h = ((lane // Wo) % Ho != 0).astype(jnp.float32)    # row 2*oh-1 valid
    border = jnp.stack([keep_w, keep_h, keep_w * keep_h])    # [3, L]

    # Layout plumbing: split x into the 4 (row-parity, col-parity) planes,
    # batch folded into lanes:  lane-in-plane = n*Ho*Wo + oh*Wo + ow.
    xp = (x_nchw.reshape(N, Cin, Ho, 2, Wo, 2)
          .transpose(1, 3, 5, 0, 2, 4)
          .reshape(Cin, 4 * L))                              # [Cin, 4*L]

    out = pl.pallas_call(
        functools.partial(_depthwise_block_kernel, Wo),
        out_shape=jax.ShapeDtypeStruct((Cout, L), jnp.float32),
        grid=(1,),                                           # single fused step
        in_specs=[
            pl.BlockSpec((Cin, 4 * L), lambda i: (0, 0)),
            pl.BlockSpec(pa.shape, lambda i: (0, 0)),
            pl.BlockSpec(pb.shape, lambda i: (0, 0)),
            pl.BlockSpec((3, L), lambda i: (0, 0)),
        ],
        out_specs=pl.BlockSpec((Cout, L), lambda i: (0, 0)),
        compiler_params=pltpu.CompilerParams(
            dimension_semantics=("arbitrary",)),
    )(xp, pa, pb, border)

    out = out.reshape(Cout, N, Ho, Wo).transpose(1, 0, 2, 3)  # back to NCHW
    if residual:
        if out.shape != x_nchw.shape:
            raise ValueError("residual=True requires stride=1 and in_c == out_c "
                             f"(got {x_nchw.shape} vs {out.shape})")
        out = x_nchw + out
    return out


# ---------------------------------------------------------------------------
# Pure-JAX reference (mirrors the PyTorch module, eval-mode BN, f32-exact).
# ---------------------------------------------------------------------------
def reference_forward(x, p, *, stride=2, residual=False):
    dn = ("NCHW", "OIHW", "NCHW")
    prec = lax.Precision.HIGHEST

    def bn(y, g, b, m, v):
        inv = 1.0 / jnp.sqrt(v + _BN_EPS)
        return (y - m[None, :, None, None]) * inv[None, :, None, None] \
            * g[None, :, None, None] + b[None, :, None, None]

    def prelu(y, a):
        return jnp.where(y > 0, y, a[None, :, None, None] * y)

    G = p["w1"].shape[1]
    w1 = jnp.transpose(p["w1"])[..., None, None]                 # [G, Cin, 1, 1]
    y = lax.conv_general_dilated(x, w1, (1, 1), "VALID",
                                 dimension_numbers=dn, precision=prec)
    y = prelu(bn(y, p["g1"], p["b1"], p["m1"], p["v1"]), p["a1"])

    w2 = jnp.transpose(p["w2"], (1, 0)).reshape(G, 1, 3, 3)      # [G, 1, 3, 3]
    y = lax.conv_general_dilated(y, w2, (stride, stride), ((1, 1), (1, 1)),
                                 feature_group_count=G,
                                 dimension_numbers=dn, precision=prec)
    y = prelu(bn(y, p["g2"], p["b2"], p["m2"], p["v2"]), p["a2"])

    w3 = jnp.transpose(p["w3"])[..., None, None]                 # [Cout, G, 1, 1]
    y = lax.conv_general_dilated(y, w3, (1, 1), "VALID",
                                 dimension_numbers=dn, precision=prec)
    y = bn(y, p["g3"], p["b3"], p["m3"], p["v3"])
    if residual:
        y = x + y
    return y


# ---------------------------------------------------------------------------
def make_params(key, in_c, groups, out_c):
    ks = jax.random.split(key, 16)
    f32 = jnp.float32

    def bn_set(k, c):
        k1, k2, k3, k4 = jax.random.split(k, 4)
        return (1.0 + 0.1 * jax.random.normal(k1, (c,), f32),   # gamma
                0.1 * jax.random.normal(k2, (c,), f32),         # beta
                0.1 * jax.random.normal(k3, (c,), f32),         # running mean
                0.5 + jax.random.uniform(k4, (c,), f32))        # running var

    g1, b1, m1, v1 = bn_set(ks[0], groups)
    g2, b2, m2, v2 = bn_set(ks[1], groups)
    g3, b3, m3, v3 = bn_set(ks[2], out_c)
    return dict(
        w1=0.3 * jax.random.normal(ks[3], (in_c, groups), f32),   # 1x1 conv, [Cin, G]
        w2=0.3 * jax.random.normal(ks[4], (9, groups), f32),      # 3x3 depthwise, [9, G]
        w3=0.3 * jax.random.normal(ks[5], (groups, out_c), f32),  # 1x1 conv, [G, out_c]
        a1=0.25 * jnp.ones((groups,), f32) + 0.05 * jax.random.normal(ks[6], (groups,), f32),
        a2=0.25 * jnp.ones((groups,), f32) + 0.05 * jax.random.normal(ks[7], (groups,), f32),
        g1=g1, b1=b1, m1=m1, v1=v1,
        g2=g2, b2=b2, m2=m2, v2=v2,
        g3=g3, b3=b3, m3=m3, v3=v3,
    )


if __name__ == "__main__":
    # DepthWise(in_c=4, out_c=8, groups=8, kernel=(3,3), stride=(2,2),
    #           padding=(1,1), residual=False)  -- module defaults.
    N, in_c, H, W = 2, 4, 16, 16
    groups, out_c = 8, 8

    key = jax.random.PRNGKey(0)
    kx, kp = jax.random.split(key)
    x = jax.random.normal(kx, (N, in_c, H, W), jnp.float32)
    params = make_params(kp, in_c, groups, out_c)

    fwd = jax.jit(functools.partial(depthwise_forward, stride=2, residual=False))
    out = jax.block_until_ready(fwd(x, params))

    ref = reference_forward(x, params, stride=2, residual=False)
    assert out.shape == (N, out_c, H // 2, W // 2), out.shape
    assert jnp.allclose(out, ref, atol=1e-4, rtol=1e-4), \
        float(jnp.max(jnp.abs(out - ref)))

    print("KERNEL_OK")
</pallas_src>

<mosaic_0001>
module attributes {stable_mosaic.version = 11 : i64} {
  func.func @_depthwise_block_kernel(%arg0: i32, %arg1: memref<4x512xf32, #tpu.memory_space<vmem>>, %arg2: memref<8x17xf32, #tpu.memory_space<vmem>>, %arg3: memref<8x9xf32, #tpu.memory_space<vmem>>, %arg4: memref<3x128xf32, #tpu.memory_space<vmem>>, %arg5: memref<8x128xf32, #tpu.memory_space<vmem>>) attributes {dimension_semantics = [#tpu.dimension_semantics<arbitrary>], iteration_bounds = array<i64: 1>, scalar_prefetch = 0 : i64, scratch_operands = 0 : i64, tpu.core_type = #tpu.core_type<tc>, window_params = [{pipeline_mode = #tpu.pipeline_mode<synchronous>, transform_indices = @transform_0, window_bounds = array<i64: 4, 512>}, {pipeline_mode = #tpu.pipeline_mode<synchronous>, transform_indices = @transform_1, window_bounds = array<i64: 8, 17>}, {pipeline_mode = #tpu.pipeline_mode<synchronous>, transform_indices = @transform_2, window_bounds = array<i64: 8, 9>}, {pipeline_mode = #tpu.pipeline_mode<synchronous>, transform_indices = @transform_3, window_bounds = array<i64: 3, 128>}, {pipeline_mode = #tpu.pipeline_mode<synchronous>, transform_indices = @transform_4, window_bounds = array<i64: 8, 128>}]} {
    %c0 = arith.constant 0 : index
    %c0_0 = arith.constant 0 : index
    %0 = vector.load %arg1[%c0, %c0_0] : memref<4x512xf32, #tpu.memory_space<vmem>>, vector<4x512xf32>
    %c0_1 = arith.constant 0 : index
    %c0_2 = arith.constant 0 : index
    %1 = vector.load %arg2[%c0_1, %c0_2] : memref<8x17xf32, #tpu.memory_space<vmem>>, vector<8x17xf32>
    %c0_3 = arith.constant 0 : index
    %c0_4 = arith.constant 0 : index
    %2 = vector.load %arg3[%c0_3, %c0_4] : memref<8x9xf32, #tpu.memory_space<vmem>>, vector<8x9xf32>
    %c0_5 = arith.constant 0 : index
    %c0_6 = arith.constant 0 : index
    %3 = vector.load %arg4[%c0_5, %c0_6] : memref<3x128xf32, #tpu.memory_space<vmem>>, vector<3x128xf32>
    %4 = vector.extract_strided_slice %1 {offsets = [0, 0], sizes = [8, 4], strides = [1, 1]} : vector<8x17xf32> to vector<8x4xf32>
    %5 = vector.extract_strided_slice %1 {offsets = [0, 4], sizes = [8, 9], strides = [1, 1]} : vector<8x17xf32> to vector<8x9xf32>
    %6 = vector.extract_strided_slice %1 {offsets = [0, 13], sizes = [8, 1], strides = [1, 1]} : vector<8x17xf32> to vector<8x1xf32>
    %7 = vector.extract_strided_slice %1 {offsets = [0, 14], sizes = [8, 1], strides = [1, 1]} : vector<8x17xf32> to vector<8x1xf32>
    %8 = vector.extract_strided_slice %1 {offsets = [0, 15], sizes = [8, 1], strides = [1, 1]} : vector<8x17xf32> to vector<8x1xf32>
    %9 = vector.extract_strided_slice %1 {offsets = [0, 16], sizes = [8, 1], strides = [1, 1]} : vector<8x17xf32> to vector<8x1xf32>
    %10 = vector.extract_strided_slice %2 {offsets = [0, 0], sizes = [8, 8], strides = [1, 1]} : vector<8x9xf32> to vector<8x8xf32>
    %11 = vector.extract_strided_slice %2 {offsets = [0, 8], sizes = [8, 1], strides = [1, 1]} : vector<8x9xf32> to vector<8x1xf32>
    %12 = vector.extract_strided_slice %4 {offsets = [0, 0], sizes = [8, 1], strides = [1, 1]} : vector<8x4xf32> to vector<8x1xf32>
    %13 = vector.extract_strided_slice %0 {offsets = [0, 0], sizes = [1, 512], strides = [1, 1]} : vector<4x512xf32> to vector<1x512xf32>
    %14 = vector.broadcast %12 : vector<8x1xf32> to vector<8x512xf32>
    %15 = vector.broadcast %13 : vector<1x512xf32> to vector<8x512xf32>
    %16 = arith.mulf %14, %15 : vector<8x512xf32>
    %17 = vector.extract_strided_slice %4 {offsets = [0, 1], sizes = [8, 1], strides = [1, 1]} : vector<8x4xf32> to vector<8x1xf32>
    %18 = vector.extract_strided_slice %0 {offsets = [1, 0], sizes = [1, 512], strides = [1, 1]} : vector<4x512xf32> to vector<1x512xf32>
    %19 = vector.broadcast %17 : vector<8x1xf32> to vector<8x512xf32>
    %20 = vector.broadcast %18 : vector<1x512xf32> to vector<8x512xf32>
    %21 = arith.mulf %19, %20 : vector<8x512xf32>
    %22 = arith.addf %16, %21 : vector<8x512xf32>
    %23 = vector.extract_strided_slice %4 {offsets = [0, 2], sizes = [8, 1], strides = [1, 1]} : vector<8x4xf32> to vector<8x1xf32>
    %24 = vector.extract_strided_slice %0 {offsets = [2, 0], sizes = [1, 512], strides = [1, 1]} : vector<4x512xf32> to vector<1x512xf32>
    %25 = vector.broadcast %23 : vector<8x1xf32> to vector<8x512xf32>
    %26 = vector.broadcast %24 : vector<1x512xf32> to vector<8x512xf32>
    %27 = arith.mulf %25, %26 : vector<8x512xf32>
    %28 = arith.addf %22, %27 : vector<8x512xf32>
    %29 = vector.extract_strided_slice %4 {offsets = [0, 3], sizes = [8, 1], strides = [1, 1]} : vector<8x4xf32> to vector<8x1xf32>
    %30 = vector.extract_strided_slice %0 {offsets = [3, 0], sizes = [1, 512], strides = [1, 1]} : vector<4x512xf32> to vector<1x512xf32>
    %31 = vector.broadcast %29 : vector<8x1xf32> to vector<8x512xf32>
    %32 = vector.broadcast %30 : vector<1x512xf32> to vector<8x512xf32>
    %33 = arith.mulf %31, %32 : vector<8x512xf32>
    %34 = arith.addf %28, %33 : vector<8x512xf32>
    %35 = vector.broadcast %6 : vector<8x1xf32> to vector<8x512xf32>
    %36 = arith.addf %34, %35 : vector<8x512xf32>
    %cst = arith.constant 0.000000e+00 : f32
    %37 = vector.broadcast %cst : f32 to vector<8x512xf32>
    %38 = arith.cmpf ogt, %36, %37 : vector<8x512xf32>
    %39 = vector.broadcast %7 : vector<8x1xf32> to vector<8x512xf32>
    %40 = arith.mulf %39, %36 : vector<8x512xf32>
    %41 = arith.select %38, %36, %40 : vector<8x512xi1>, vector<8x512xf32>
    %42 = vector.extract_strided_slice %41 {offsets = [0, 375], sizes = [8, 128], strides = [1, 1]} : vector<8x512xf32> to vector<8x128xf32>
    %43 = vector.extract_strided_slice %3 {offsets = [2, 0], sizes = [1, 128], strides = [1, 1]} : vector<3x128xf32> to vector<1x128xf32>
    %44 = vector.broadcast %43 : vector<1x128xf32> to vector<8x128xf32>
    %45 = arith.mulf %42, %44 : vector<8x128xf32>
    %46 = vector.extract_strided_slice %5 {offsets = [0, 0], sizes = [8, 1], strides = [1, 1]} : vector<8x9xf32> to vector<8x1xf32>
    %47 = vector.broadcast %46 : vector<8x1xf32> to vector<8x128xf32>
    %48 = arith.mulf %47, %45 : vector<8x128xf32>
    %49 = vector.extract_strided_slice %41 {offsets = [0, 248], sizes = [8, 128], strides = [1, 1]} : vector<8x512xf32> to vector<8x128xf32>
    %50 = vector.extract_strided_slice %3 {offsets = [1, 0], sizes = [1, 128], strides = [1, 1]} : vector<3x128xf32> to vector<1x128xf32>
    %51 = vector.broadcast %50 : vector<1x128xf32> to vector<8x128xf32>
    %52 = arith.mulf %49, %51 : vector<8x128xf32>
    %53 = vector.extract_strided_slice %5 {offsets = [0, 1], sizes = [8, 1], strides = [1, 1]} : vector<8x9xf32> to vector<8x1xf32>
    %54 = vector.broadcast %53 : vector<8x1xf32> to vector<8x128xf32>
    %55 = arith.mulf %54, %52 : vector<8x128xf32>
    %56 = arith.addf %48, %55 : vector<8x128xf32>
    %57 = vector.extract_strided_slice %41 {offsets = [0, 376], sizes = [8, 128], strides = [1, 1]} : vector<8x512xf32> to vector<8x128xf32>
    %58 = vector.extract_strided_slice %3 {offsets = [1, 0], sizes = [1, 128], strides = [1, 1]} : vector<3x128xf32> to vector<1x128xf32>
    %59 = vector.broadcast %58 : vector<1x128xf32> to vector<8x128xf32>
    %60 = arith.mulf %57, %59 : vector<8x128xf32>
    %61 = vector.extract_strided_slice %5 {offsets = [0, 2], sizes = [8, 1], strides = [1, 1]} : vector<8x9xf32> to vector<8x1xf32>
    %62 = vector.broadcast %61 : vector<8x1xf32> to vector<8x128xf32>
    %63 = arith.mulf %62, %60 : vector<8x128xf32>
    %64 = arith.addf %56, %63 : vector<8x128xf32>
    %65 = vector.extract_strided_slice %41 {offsets = [0, 127], sizes = [8, 128], strides = [1, 1]} : vector<8x512xf32> to vector<8x128xf32>
    %66 = vector.extract_strided_slice %3 {offsets = [0, 0], sizes = [1, 128], strides = [1, 1]} : vector<3x128xf32> to vector<1x128xf32>
    %67 = vector.broadcast %66 : vector<1x128xf32> to vector<8x128xf32>
    %68 = arith.mulf %65, %67 : vector<8x128xf32>
    %69 = vector.extract_strided_slice %5 {offsets = [0, 3], sizes = [8, 1], strides = [1, 1]} : vector<8x9xf32> to vector<8x1xf32>
    %70 = vector.broadcast %69 : vector<8x1xf32> to vector<8x128xf32>
    %71 = arith.mulf %70, %68 : vector<8x128xf32>
    %72 = arith.addf %64, %71 : vector<8x128xf32>
    %73 = vector.extract_strided_slice %41 {offsets = [0, 0], sizes = [8, 128], strides = [1, 1]} : vector<8x512xf32> to vector<8x128xf32>
    %74 = vector.extract_strided_slice %5 {offsets = [0, 4], sizes = [8, 1], strides = [1, 1]} : vector<8x9xf32> to vector<8x1xf32>
    %75 = vector.broadcast %74 : vector<8x1xf32> to vector<8x128xf32>
    %76 = arith.mulf %75, %73 : vector<8x128xf32>
    %77 = arith.addf %72, %76 : vector<8x128xf32>
    %78 = vector.extract_strided_slice %41 {offsets = [0, 128], sizes = [8, 128], strides = [1, 1]} : vector<8x512xf32> to vector<8x128xf32>
    %79 = vector.extract_strided_slice %5 {offsets = [0, 5], sizes = [8, 1], strides = [1, 1]} : vector<8x9xf32> to vector<8x1xf32>
    %80 = vector.broadcast %79 : vector<8x1xf32> to vector<8x128xf32>
    %81 = arith.mulf %80, %78 : vector<8x128xf32>
    %82 = arith.addf %77, %81 : vector<8x128xf32>
    %83 = vector.extract_strided_slice %41 {offsets = [0, 383], sizes = [8, 128], strides = [1, 1]} : vector<8x512xf32> to vector<8x128xf32>
    %84 = vector.extract_strided_slice %3 {offsets = [0, 0], sizes = [1, 128], strides = [1, 1]} : vector<3x128xf32> to vector<1x128xf32>
    %85 = vector.broadcast %84 : vector<1x128xf32> to vector<8x128xf32>
    %86 = arith.mulf %83, %85 : vector<8x128xf32>
    %87 = vector.extract_strided_slice %5 {offsets = [0, 6], sizes = [8, 1], strides = [1, 1]} : vector<8x9xf32> to vector<8x1xf32>
    %88 = vector.broadcast %87 : vector<8x1xf32> to vector<8x128xf32>
    %89 = arith.mulf %88, %86 : vector<8x128xf32>
    %90 = arith.addf %82, %89 : vector<8x128xf32>
    %91 = vector.extract_strided_slice %41 {offsets = [0, 256], sizes = [8, 128], strides = [1, 1]} : vector<8x512xf32> to vector<8x128xf32>
    %92 = vector.extract_strided_slice %5 {offsets = [0, 7], sizes = [8, 1], strides = [1, 1]} : vector<8x9xf32> to vector<8x1xf32>
    %93 = vector.broadcast %92 : vector<8x1xf32> to vector<8x128xf32>
    %94 = arith.mulf %93, %91 : vector<8x128xf32>
    %95 = arith.addf %90, %94 : vector<8x128xf32>
    %96 = vector.extract_strided_slice %41 {offsets = [0, 384], sizes = [8, 128], strides = [1, 1]} : vector<8x512xf32> to vector<8x128xf32>
    %97 = vector.extract_strided_slice %5 {offsets = [0, 8], sizes = [8, 1], strides = [1, 1]} : vector<8x9xf32> to vector<8x1xf32>
    %98 = vector.broadcast %97 : vector<8x1xf32> to vector<8x128xf32>
    %99 = arith.mulf %98, %96 : vector<8x128xf32>
    %100 = arith.addf %95, %99 : vector<8x128xf32>
    %101 = vector.broadcast %8 : vector<8x1xf32> to vector<8x128xf32>
    %102 = arith.addf %100, %101 : vector<8x128xf32>
    %cst_7 = arith.constant 0.000000e+00 : f32
    %103 = vector.broadcast %cst_7 : f32 to vector<8x128xf32>
    %104 = arith.cmpf ogt, %102, %103 : vector<8x128xf32>
    %105 = vector.broadcast %9 : vector<8x1xf32> to vector<8x128xf32>
    %106 = arith.mulf %105, %102 : vector<8x128xf32>
    %107 = arith.select %104, %102, %106 : vector<8x128xi1>, vector<8x128xf32>
    %108 = vector.extract_strided_slice %10 {offsets = [0, 0], sizes = [8, 1], strides = [1, 1]} : vector<8x8xf32> to vector<8x1xf32>
    %109 = vector.extract_strided_slice %107 {offsets = [0, 0], sizes = [1, 128], strides = [1, 1]} : vector<8x128xf32> to vector<1x128xf32>
    %110 = vector.broadcast %108 : vector<8x1xf32> to vector<8x128xf32>
    %111 = vector.broadcast %109 : vector<1x128xf32> to vector<8x128xf32>
    %112 = arith.mulf %110, %111 : vector<8x128xf32>
    %113 = vector.extract_strided_slice %10 {offsets = [0, 1], sizes = [8, 1], strides = [1, 1]} : vector<8x8xf32> to vector<8x1xf32>
    %114 = vector.extract_strided_slice %107 {offsets = [1, 0], sizes = [1, 128], strides = [1, 1]} : vector<8x128xf32> to vector<1x128xf32>
    %115 = vector.broadcast %113 : vector<8x1xf32> to vector<8x128xf32>
    %116 = vector.broadcast %114 : vector<1x128xf32> to vector<8x128xf32>
    %117 = arith.mulf %115, %116 : vector<8x128xf32>
    %118 = arith.addf %112, %117 : vector<8x128xf32>
    %119 = vector.extract_strided_slice %10 {offsets = [0, 2], sizes = [8, 1], strides = [1, 1]} : vector<8x8xf32> to vector<8x1xf32>
    %120 = vector.extract_strided_slice %107 {offsets = [2, 0], sizes = [1, 128], strides = [1, 1]} : vector<8x128xf32> to vector<1x128xf32>
    %121 = vector.broadcast %119 : vector<8x1xf32> to vector<8x128xf32>
    %122 = vector.broadcast %120 : vector<1x128xf32> to vector<8x128xf32>
    %123 = arith.mulf %121, %122 : vector<8x128xf32>
    %124 = arith.addf %118, %123 : vector<8x128xf32>
    %125 = vector.extract_strided_slice %10 {offsets = [0, 3], sizes = [8, 1], strides = [1, 1]} : vector<8x8xf32> to vector<8x1xf32>
    %126 = vector.extract_strided_slice %107 {offsets = [3, 0], sizes = [1, 128], strides = [1, 1]} : vector<8x128xf32> to vector<1x128xf32>
    %127 = vector.broadcast %125 : vector<8x1xf32> to vector<8x128xf32>
    %128 = vector.broadcast %126 : vector<1x128xf32> to vector<8x128xf32>
    %129 = arith.mulf %127, %128 : vector<8x128xf32>
    %130 = arith.addf %124, %129 : vector<8x128xf32>
    %131 = vector.extract_strided_slice %10 {offsets = [0, 4], sizes = [8, 1], strides = [1, 1]} : vector<8x8xf32> to vector<8x1xf32>
    %132 = vector.extract_strided_slice %107 {offsets = [4, 0], sizes = [1, 128], strides = [1, 1]} : vector<8x128xf32> to vector<1x128xf32>
    %133 = vector.broadcast %131 : vector<8x1xf32> to vector<8x128xf32>
    %134 = vector.broadcast %132 : vector<1x128xf32> to vector<8x128xf32>
    %135 = arith.mulf %133, %134 : vector<8x128xf32>
    %136 = arith.addf %130, %135 : vector<8x128xf32>
    %137 = vector.extract_strided_slice %10 {offsets = [0, 5], sizes = [8, 1], strides = [1, 1]} : vector<8x8xf32> to vector<8x1xf32>
    %138 = vector.extract_strided_slice %107 {offsets = [5, 0], sizes = [1, 128], strides = [1, 1]} : vector<8x128xf32> to vector<1x128xf32>
    %139 = vector.broadcast %137 : vector<8x1xf32> to vector<8x128xf32>
    %140 = vector.broadcast %138 : vector<1x128xf32> to vector<8x128xf32>
    %141 = arith.mulf %139, %140 : vector<8x128xf32>
    %142 = arith.addf %136, %141 : vector<8x128xf32>
    %143 = vector.extract_strided_slice %10 {offsets = [0, 6], sizes = [8, 1], strides = [1, 1]} : vector<8x8xf32> to vector<8x1xf32>
    %144 = vector.extract_strided_slice %107 {offsets = [6, 0], sizes = [1, 128], strides = [1, 1]} : vector<8x128xf32> to vector<1x128xf32>
    %145 = vector.broadcast %143 : vector<8x1xf32> to vector<8x128xf32>
    %146 = vector.broadcast %144 : vector<1x128xf32> to vector<8x128xf32>
    %147 = arith.mulf %145, %146 : vector<8x128xf32>
    %148 = arith.addf %142, %147 : vector<8x128xf32>
    %149 = vector.extract_strided_slice %10 {offsets = [0, 7], sizes = [8, 1], strides = [1, 1]} : vector<8x8xf32> to vector<8x1xf32>
    %150 = vector.extract_strided_slice %107 {offsets = [7, 0], sizes = [1, 128], strides = [1, 1]} : vector<8x128xf32> to vector<1x128xf32>
    %151 = vector.broadcast %149 : vector<8x1xf32> to vector<8x128xf32>
    %152 = vector.broadcast %150 : vector<1x128xf32> to vector<8x128xf32>
    %153 = arith.mulf %151, %152 : vector<8x128xf32>
    %154 = arith.addf %148, %153 : vector<8x128xf32>
    %155 = vector.broadcast %11 : vector<8x1xf32> to vector<8x128xf32>
    %156 = arith.addf %154, %155 : vector<8x128xf32>
    %c0_8 = arith.constant 0 : index
    %c0_9 = arith.constant 0 : index
    %157 = vector.load %arg5[%c0_8, %c0_9] : memref<8x128xf32, #tpu.memory_space<vmem>>, vector<8x128xf32>
    tpu.vector_store %arg5[%c0_8, %c0_9], %156 {strides = array<i32>} : memref<8x128xf32, #tpu.memory_space<vmem>>, vector<8x128xf32>,
    return
  }
  func.func @transform_0(%arg0: i32) -> (i32, i32) {
    %c0_i32 = arith.constant 0 : i32
    %c0_i32_0 = arith.constant 0 : i32
    %c0_i32_1 = arith.constant 0 : i32
    return %c0_i32, %c0_i32_0 : i32, i32
  }
  func.func @transform_1(%arg0: i32) -> (i32, i32) {
    %c0_i32 = arith.constant 0 : i32
    %c0_i32_0 = arith.constant 0 : i32
    %c0_i32_1 = arith.constant 0 : i32
    return %c0_i32, %c0_i32_0 : i32, i32
  }
  func.func @transform_2(%arg0: i32) -> (i32, i32) {
    %c0_i32 = arith.constant 0 : i32
    %c0_i32_0 = arith.constant 0 : i32
    %c0_i32_1 = arith.constant 0 : i32
    return %c0_i32, %c0_i32_0 : i32, i32
  }
  func.func @transform_3(%arg0: i32) -> (i32, i32) {
    %c0_i32 = arith.constant 0 : i32
    %c0_i32_0 = arith.constant 0 : i32
    %c0_i32_1 = arith.constant 0 : i32
    return %c0_i32, %c0_i32_0 : i32, i32
  }
  func.func @transform_4(%arg0: i32) -> (i32, i32) {
    %c0_i32 = arith.constant 0 : i32
    %c0_i32_0 = arith.constant 0 : i32
    %c0_i32_1 = arith.constant 0 : i32
    return %c0_i32, %c0_i32_0 : i32, i32
  }
}

</mosaic_0001>

<bundles_post_ra>
// kernel: depthwise_forward.1
= control target key start
LH: loop header
LB: loop body
LE: loop exit
PB: predicated region body
PF: predicated region fallthrough
CT: control target
= control target key end

     0   :  { %v601_v0 = vmov 2   ;;  %v602_v1 = vmov 0   ;;  %v29_v3 = vlaneseq  ;;  %v603_v5 = vmov 3   ;;  %s608_s18 = smov 120   ;;  %s619_s19 = smov 119   ;;  %s817_s1 = inlined_call_operand.vmem [shape: f32[8,17], index: 1, kind: input, shape index: {}]   ;;  %s818_s3 = inlined_call_operand.vmem [shape: f32[3,128], index: 3, kind: input, shape index: {}]   ;;  %s819_s0 = inlined_call_operand.vmem [shape: f32[4,512], index: 0, kind: input, shape index: {}]   ;;  %s820_s2 = inlined_call_operand.vmem [shape: f32[8,9], index: 2, kind: input, shape index: {}]   ;;  %s821_s4 = inlined_call_operand.vmem [shape: f32[8,128], index: 4, kind: output, shape index: {}]  }
   0x1   :  { %576 = vset.pattern.permute.xlu1 %v601_v0  ;;  %574 = vset.pattern.permute.xlu0 %v602_v1  ;;  %v652_v2 = vld [vmem:[%s817_s1] sm:$0xff]  ;;  %v604_v6 = vmov 1   ;;  %v605_v9 = vmov 13   ;;  %v606_v10 = vmov 14   ;;  %v607_v13 = vmov 5   ;;  %v713_v33 = vld [vmem:[%s819_s0 + $0x8] sm:$0xff] }
   0x2   :  { %118 = vperm.xlu1 %576, %v652_v2   ;;  %24 = vperm.xlu0 %574, %v652_v2   ;;  %v656_v4 = vshrl.u32 %v29_v3, 7  ;;  %v21_v8 = vld [vmem:[%s818_s3] sm:$0x7]  ;;  %v609_v15 = vmov 9   ;;  %s610_s3 = smov 127   ;;  %v611_v16 = vmov 6  }
   0x3   :  { %v612_v17 = vmov 7   ;;  %v613_v18 = vmov 12   ;;  %v614_v19 = vmov 8   ;;  %v615_v20 = vmov 15   ;;  %v17_v29 = vld [vmem:[%s819_s0] sm:$0xff] }
   0x4   :  { %v662_v7 = vsub.s32 1, %v656_v4  ;;  %v671_v12 = vsub.s32 0, %v656_v4  ;;  %v616_v21 = vmov 10   ;;  %v617_v22 = vmov 11  }
   0x5   :  { %v690_v23 = vsub.s32 2, %v656_v4  ;;  %v618_v24 = vmov 4   ;;  %v620_v26 = vmov 16   ;;  %v697_v27 = vsub.s32 4, %v656_v4 }
   0x6   :  { %577 = vset.pattern.permute.xlu1 %v603_v5  ;;  %575 = vset.pattern.permute.xlu0 %v604_v6  ;;  %v256_v11 = vrot.slane %v21_v8, %v662_v7  ;;  %v302_v14 = vrot.slane %v21_v8, %v671_v12  ;;  %v700_v28 = vsub.s32 5, %v656_v4  ;;  %v706_v30 = vsub.s32 6, %v656_v4 }
   0x7   :  { %166 = vperm.xlu1 %577, %v652_v2   ;;  %70 = vperm.xlu0 %575, %v652_v2   ;;  %v240_v25 = vrot.slane %v21_v8, %v690_v23  ;;  %v36_v31 = vrot.slane %v17_v29, %v697_v27  ;;  %v32_v32 = vrot.slane %v17_v29, %v671_v12  ;;  %v716_v34 = vsub.s32 7, %v656_v4 }
   0x8   :  { %v76_v35 = vrot.slane %v17_v29, %v662_v7  ;;  %v80_v36 = vrot.slane %v17_v29, %v700_v28  ;;  %v40_v39 = vrot.slane %v713_v33, %v671_v12  ;;  %v84_v40 = vrot.slane %v713_v33, %v662_v7 }
   0x9   :  { %v128_v41 = vrot.slane %v17_v29, %v706_v30  ;;  %v56_v42 = vrot.slane %v36_v31, %v671_v12  ;;  %v52_v43 = vrot.slane %v32_v32, %v671_v12  ;;  %v176_v44 = vrot.slane %v17_v29, %v716_v34 }
   0xa   :  { %v96_v45 = vrot.slane %v76_v35, %v662_v7  ;;  %v100_v46 = vrot.slane %v80_v36, %v662_v7  ;;  %v124_v47 = vrot.slane %v17_v29, %v690_v23  ;;  %v60_v48 = vrot.slane %v40_v39, %v671_v12 }
   0xb   :  { %578 = vset.pattern.permute.xlu1 %v605_v9  ;;  %579 = vset.pattern.permute.xlu0 %v606_v10  ;;  %v735_v49 = vsub.s32 3, %v656_v4  ;;  %v104_v50 = vrot.slane %v84_v40, %v662_v7  ;;  %v148_v51 = vrot.slane %v128_v41, %v690_v23  ;;  %v132_v55 = vrot.slane %v713_v33, %v690_v23 }
   0xc   :  { %214 = vperm.xlu1 %578, %v652_v2   ;;  %226 = vperm.xlu0 %579, %v652_v2   ;;  %v144_v60 = vrot.slane %v124_v47, %v690_v23  ;;  %v44_v4 = vrot.slane %v713_v33, %v697_v27  ;;  %v88_v10 = vrot.slane %v713_v33, %v700_v28  ;;  %vm275_vm4 = vcmask 1039360  }
   0xd   :  { %v196_v57 = vrot.slane %v176_v44, %v735_v49  ;;  %v172_v62 = vrot.slane %v17_v29, %v735_v49  ;;  %v152_v8 = vrot.slane %v132_v55, %v690_v23  ;;  %v180_v9 = vrot.slane %v713_v33, %v735_v49 }
   0xe   :  { %v108_v35 = vrot.slane %v88_v10, %v662_v7  ;;  %v184_v55 = vrot.slane %v713_v33, %v716_v34  ;;  %vm321_vm5 = vcmask 982016   ;;  %vm545_vm8 = vcmask 72704  }
   0xf   :  { %v200_v32 = vrot.slane %v180_v9, %v735_v49 }
  0x10   :  { %580 = vset.pattern.permute.xlu1 %v607_v13  ;;  %258 = vrot.lane.b32.xlu0 %v256_v11, %s608_s18 }
  0x11   :  { %264 = vperm.xlu1 %580, %v652_v2   ;;  %584 = vset.pattern.permute.xlu0 %v609_v15 }
  0x14   :  { %304 = vrot.lane.b32.xlu0 %v302_v14, %s610_s3 }
  0x15   :  { %581 = vset.pattern.permute.xlu1 %v611_v16 }
  0x16   :  { %283 = vperm.xlu1 %581, %v652_v2  }
  0x18   :  { %339 = vperm.xlu0 %584, %v652_v2  }
  0x1a   :  { %582 = vset.pattern.permute.xlu1 %v612_v17 }
  0x1b   :  { %310 = vperm.xlu1 %582, %v652_v2  }
  0x1c   :  { %587 = vset.pattern.permute.xlu0 %v613_v18 }
  0x1d   :  { %380 = vperm.xlu0 %587, %v652_v2  }
  0x1f   :  { %583 = vset.pattern.permute.xlu1 %v614_v19 }
  0x20   :  { %328 = vperm.xlu1 %583, %v652_v2  }
  0x21   :  { %589 = vset.pattern.permute.xlu0 %v615_v20 }
  0x22   :  { %391 = vperm.xlu0 %589, %v652_v2  }
  0x24   :  { %585 = vset.pattern.permute.xlu1 %v616_v21 }
  0x25   :  { %352 = vperm.xlu1 %585, %v652_v2  }
  0x26   :  { %592 = vset.pattern.permute.xlu0 %v604_v6 }
  0x29   :  { %586 = vset.pattern.permute.xlu1 %v617_v22  ;;  %v192_v22 = vrot.slane %v172_v62, %v735_v49 }
  0x2a   :  { %369 = vperm.xlu1 %586, %v652_v2  }
  0x2e   :  { %588 = vset.pattern.permute.xlu1 %v618_v24 }
  0x2f   :  { %248 = vperm.xlu1 %588, %v652_v2  }
  0x33   :  { %242 = vrot.lane.b32.xlu1 %v240_v25, %s619_s19 }
  0x34   :  { %590 = vset.pattern.permute.xlu1 %v620_v26  ;;  %v64_v26 = vrot.slane %v44_v4, %v671_v12 }
  0x7d   :  { %v720_v37 = vpop.permute.xlu1 %118  ;;  %v25_v38 = vpop.permute.xlu0 %24 }
  0x7e   :  { %v66_v52 = vmul.f32 %v56_v42, %v25_v38  ;;  %v65_v56 = vmul.f32 %v52_v43, %v25_v38  ;;  %v67_v61 = vmul.f32 %v60_v48, %v25_v38  ;;  %v158_v3 = vmul.f32 %v148_v51, %v720_v37 }
  0x7f   :  { %v157_v21 = vmul.f32 %v144_v60, %v720_v37  ;;  %v159_v31 = vmul.f32 %v152_v8, %v720_v37  ;;  %v136_v42 = vrot.slane %v713_v33, %v706_v30 }
  0x82   :  { %v167_v53 = vpop.permute.xlu1 %166  ;;  %v71_v54 = vpop.permute.xlu0 %70 }
  0x83   :  { %v109_v58 = vmul.f32 %v96_v45, %v71_v54  ;;  %v110_v59 = vmul.f32 %v100_v46, %v71_v54  ;;  %v111_v63 = vmul.f32 %v104_v50, %v71_v54  ;;  %v206_v18 = vmul.f32 %v196_v57, %v167_v53 }
  0x84   :  { %v205_v43 = vmul.f32 %v192_v22, %v167_v53  ;;  %v68_v45 = vmul.f32 %v64_v26, %v25_v38  ;;  %v207_v46 = vmul.f32 %v200_v32, %v167_v53  ;;  %v112_v47 = vmul.f32 %v108_v35, %v71_v54 }
  0x85   :  { %v114_v6 = vadd.f32 %v110_v59, %v66_v52  ;;  %v113_v11 = vadd.f32 %v109_v58, %v65_v56  ;;  %v115_v25 = vadd.f32 %v111_v63, %v67_v61  ;;  %v156_v52 = vrot.slane %v136_v42, %v690_v23 }
  0x86   :  { %v116_v58 = vadd.f32 %v112_v47, %v68_v45  ;;  %v204_v54 = vrot.slane %v184_v55, %v735_v49 }
  0x87   :  { %v215_v14 = vpop.permute.xlu1 %214  ;;  %v227_v15 = vpop.permute.xlu0 %226  ;;  %v162_v20 = vadd.f32 %v158_v3, %v114_v6  ;;  %v161_v36 = vadd.f32 %v157_v21, %v113_v11  ;;  %v163_v44 = vadd.f32 %v159_v31, %v115_v25  ;;  %v160_v38 = vmul.f32 %v156_v52, %v720_v37 }
  0x88   :  { %v208_v8 = vmul.f32 %v204_v54, %v167_v53 }
  0x89   :  { %v210_v29 = vadd.f32 %v206_v18, %v162_v20  ;;  %v209_v48 = vadd.f32 %v205_v43, %v161_v36  ;;  %v211_v56 = vadd.f32 %v207_v46, %v163_v44  ;;  %v164_v4 = vadd.f32 %v160_v38, %v116_v58 }
  0x8b   :  { %v259_v39 = vpop.permute.xlu0 %258  ;;  %v218_v40 = vadd.f32 %v215_v14, %v210_v29  ;;  %v217_v59 = vadd.f32 %v215_v14, %v209_v48  ;;  %v219_v63 = vadd.f32 %v215_v14, %v211_v56  ;;  %v212_v9 = vadd.f32 %v208_v8, %v164_v4 }
  0x8c   :  { %v265_v41 = vpop.permute.xlu1 %264 }
  0x8d   :  { %v230_v50 = vmul.f32 %v227_v15, %v218_v40  ;;  %vm222_vm0 = vcmp.gt.f32.partialorder %v218_v40, 0.0  ;;  %v229_v6 = vmul.f32 %v227_v15, %v217_v59  ;;  %vm221_vm1 = vcmp.gt.f32.partialorder %v217_v59, 0.0 }
  0x8e   :  { %v231_v33 = vmul.f32 %v227_v15, %v219_v63  ;;  %vm223_vm2 = vcmp.gt.f32.partialorder %v219_v63, 0.0  ;;  %v220_v37 = vadd.f32 %v215_v14, %v212_v9 }
  0x8f   :  { %v305_v51 = vpop.permute.xlu0 %304  ;;  %v234_v60 = vsel %vm222_vm0, %v218_v40, %v230_v50  ;;  %v233_v11 = vsel %vm221_vm1, %v217_v59, %v229_v6 }
  0x90   :  { %v261_v18 = vmul.f32 %v259_v39, %v234_v60  ;;  %v766_v21 = vsel %vm223_vm2, %v219_v63, %v231_v33  ;;  %v232_v29 = vmul.f32 %v227_v15, %v220_v37  ;;  %vm224_vm3 = vcmp.gt.f32.partialorder %v220_v37, 0.0 }
  0x91   :  { %v284_v57 = vpop.permute.xlu1 %283  ;;  %v262_v22 = vmul.f32 %v259_v39, %v766_v21  ;;  %v307_v32 = vmul.f32 %v305_v51, %v233_v11  ;;  %v349_v43 = vmul.f32 %v305_v51, %v766_v21  ;;  %v308_v46 = vmul.f32 %v305_v51, %v234_v60 }
  0x92   :  { %v267_v25 = vmul.f32 %v265_v41, %v261_v18  ;;  %v236_v36 = vsel %vm224_vm3, %v220_v37, %v232_v29 }
  0x93   :  { %v340_v61 = vpop.permute.xlu0 %339  ;;  %v286_v53 = vmul.f32 %v284_v57, %v262_v22  ;;  %v281_v14 = vmul.f32 %v259_v39, %v236_v36  ;;  %v268_v42 = vmul.f32 %v265_v41, %v262_v22  ;;  %v20_v39 = vld [vmem:[%s820_s2] sm:$0xff]  ;;  %v350_v41 = vmul.f32 %v305_v51, %v236_v36  ;;  %s621_s2 = smov 9  }
  0x94   :  { %v342_v62 = vmul.f32 %v340_v61, %v234_v60 }
  0x95   :  { %v287_v45 = vmul.f32 %v284_v57, %v281_v14 }
  0x96   :  { %v311_v3 = vpop.permute.xlu1 %310  ;;  %344 = vrot.lane.b32.xlu1 %v342_v62, %s619_s19 }
  0x97   :  { %v313_v40 = vmul.f32 %v311_v3, %v307_v32  ;;  %v314_v48 = vmul.f32 %v311_v3, %v308_v46 }
  0x98   :  { %v381_v15 = vpop.permute.xlu0 %380 }
  0x99   :  { %v383_v47 = vmul.f32 %v381_v15, %v236_v36 }
  0x9b   :  { %v329_v10 = vpop.permute.xlu1 %328 }
  0x9c   :  { %v331_v20 = vmul.f32 %v329_v10, %v233_v11 }
  0x9e   :  { %333 = vrot.lane.b32.xlu0 %v331_v20, %s619_s19 }
  0xa0   :  { %v353_v26 = vpop.permute.xlu1 %352 }
  0xa1   :  { %v355_v44 = vmul.f32 %v353_v26, %v349_v43  ;;  %v356_v50 = vmul.f32 %v353_v26, %v350_v41 }
  0xa2   :  { %271 = vrot.lane.b32.xlu0 %v267_v25, %s610_s3 }
  0xa5   :  { %v370_v31 = vpop.permute.xlu1 %369 }
  0xa6   :  { %v372_v35 = vmul.f32 %v370_v31, %v766_v21  ;;  %290 = vrot.lane.b32.xlu0 %v286_v53, %s610_s3 }
  0xa8   :  { %374 = vrot.lane.b32.xlu1 %v372_v35, %s619_s19 }
  0xaa   :  { %317 = vrot.lane.b32.xlu0 %v313_v40, %s608_s18 }
  0xac   :  { %273 = vrot.lane.b32.xlu1 %v268_v42, %s610_s3 }
  0xae   :  { %359 = vrot.lane.b32.xlu0 %v355_v44, %s608_s18 }
  0xb0   :  { %292 = vrot.lane.b32.xlu1 %v287_v45, %s610_s3 }
  0xb2   :  { %385 = vrot.lane.b32.xlu0 %v383_v47, %s619_s19 }
  0xb4   :  { %319 = vrot.lane.b32.xlu1 %v314_v48, %s608_s18 }
  0xb6   :  { %422 = vperm.xlu0 %592, %v20_v39  }
  0xb8   :  { %399 = vperm.xlu1 %590, %v652_v2  }
  0xba   :  { %595 = vset.pattern.permute.xlu0 %v618_v24 }
  0xbb   :  { %470 = vperm.xlu0 %595, %v20_v39  }
  0xbc   :  { %361 = vrot.lane.b32.xlu1 %v356_v50, %s608_s18 }
  0xbd   :  { %591 = vset.pattern.permute.xlu1 %v602_v1  ;;  %v249_v1 = vpop.permute.xlu1 %248 }
  0xbf   :  { %598 = vset.pattern.permute.xlu0 %v612_v17  ;;  %v392_v17 = vpop.permute.xlu0 %391 }
  0xc0   :  { %408 = vperm.xlu1 %591, %v20_v39   ;;  %518 = vperm.xlu0 %598, %v20_v39  }
  0xc1   :  { %v243_v2 = vpop.permute.xlu1 %242 }
  0xc2   :  { %v245_v57 = vmul.f32 %v243_v2, %v766_v21 }
  0xc4   :  { %593 = vset.pattern.permute.xlu1 %v601_v0  ;;  %600 = vset.pattern.permute.xlu0 %v614_v19  ;;  %v251_v59 = vmul.f32 %v249_v1, %v245_v57 }
  0xc5   :  { %438 = vperm.xlu1 %593, %v20_v39  }
  0xc9   :  { %594 = vset.pattern.permute.xlu1 %v603_v5  ;;  %v246_v5 = vmul.f32 %v243_v2, %v236_v36 }
  0xca   :  { %454 = vperm.xlu1 %594, %v20_v39  }
  0xcb   :  { %v252_v58 = vmul.f32 %v249_v1, %v246_v5 }
  0xce   :  { %596 = vset.pattern.permute.xlu1 %v607_v13 }
  0xcf   :  { %486 = vperm.xlu1 %596, %v20_v39  }
  0xd3   :  { %597 = vset.pattern.permute.xlu1 %v611_v16 }
  0xd4   :  { %502 = vperm.xlu1 %597, %v20_v39  }
  0xd8   :  { %599 = vset.pattern.permute.xlu1 %v614_v19 }
  0xd9   :  { %534 = vperm.xlu1 %599, %v20_v39  }
 0x108   :  { %v345_v24 = vpop.permute.xlu1 %344 }
 0x110   :  { %v334_v0 = vpop.permute.xlu0 %333 }
 0x114   :  { %v272_v55 = vpop.permute.xlu0 %271 }
 0x118   :  { %v291_v13 = vpop.permute.xlu0 %290 }
 0x11a   :  { %v375_v51 = vpop.permute.xlu1 %374 }
 0x11c   :  { %v318_v62 = vpop.permute.xlu0 %317 }
 0x11e   :  { %v274_v52 = vpop.permute.xlu1 %273 }
 0x11f   :  { %v276_v16 = vsel %vm275_vm4, %v272_v55, %v274_v52  ;;  %v280_v60 = vadd.f32 %v274_v52, %v252_v58 }
 0x120   :  { %v279_v38 = vadd.f32 %v276_v16, %v251_v59  ;;  %v360_v10 = vpop.permute.xlu0 %359 }
 0x122   :  { %v293_v56 = vpop.permute.xlu1 %292 }
 0x123   :  { %v294_v61 = vsel %vm275_vm4, %v291_v13, %v293_v56  ;;  %v298_v54 = vadd.f32 %v293_v56, %v280_v60 }
 0x124   :  { %v297_v3 = vadd.f32 %v294_v61, %v279_v38  ;;  %v386_v26 = vpop.permute.xlu0 %385 }
 0x126   :  { %v320_v19 = vpop.permute.xlu1 %319 }
 0x127   :  { %v322_v63 = vsel %vm321_vm5, %v318_v62, %v320_v19  ;;  %v326_v4 = vadd.f32 %v320_v19, %v298_v54 }
 0x128   :  { %v325_v6 = vadd.f32 %v322_v63, %v297_v3 }
 0x129   :  { %v337_v8 = vadd.f32 %v334_v0, %v326_v4 }
 0x12a   :  { %v336_v33 = vadd.f32 %v334_v0, %v325_v6 }
 0x12b   :  { %v348_v11 = vadd.f32 %v345_v24, %v337_v8 }
 0x12c   :  { %v347_v20 = vadd.f32 %v345_v24, %v336_v33 }
 0x131   :  { %v423_v46 = vpop.permute.xlu0 %422 }
 0x133   :  { %v400_v9 = vpop.permute.xlu1 %399 }
 0x136   :  { %v471_v13 = vpop.permute.xlu0 %470 }
 0x137   :  { %v362_v18 = vpop.permute.xlu1 %361 }
 0x138   :  { %v363_v21 = vsel %vm321_vm5, %v360_v10, %v362_v18  ;;  %v367_v37 = vadd.f32 %v362_v18, %v348_v11 }
 0x139   :  { %v366_v22 = vadd.f32 %v363_v21, %v347_v20 }
 0x13a   :  { %v378_v25 = vadd.f32 %v375_v51, %v367_v37 }
 0x13b   :  { %v377_v29 = vadd.f32 %v375_v51, %v366_v22  ;;  %v409_v53 = vpop.permute.xlu1 %408 }
 0x13c   :  { %v389_v31 = vadd.f32 %v386_v26, %v378_v25 }
 0x13d   :  { %v388_v32 = vadd.f32 %v386_v26, %v377_v29 }
 0x13e   :  { %v395_v35 = vadd.f32 %v392_v17, %v389_v31 }
 0x13f   :  { %v394_v36 = vadd.f32 %v392_v17, %v388_v32 }
 0x140   :  { %vm397_vm6 = vcmp.gt.f32.partialorder %v395_v35, 0.0  ;;  %v403_v40 = vmul.f32 %v400_v9, %v395_v35  ;;  %v439_v14 = vpop.permute.xlu1 %438 }
 0x141   :  { %vm396_vm7 = vcmp.gt.f32.partialorder %v394_v36, 0.0  ;;  %v402_v42 = vmul.f32 %v400_v9, %v394_v36  ;;  %v519_v9 = vpop.permute.xlu0 %518 }
 0x142   :  { %v405_v43 = vsel %vm397_vm6, %v395_v35, %v403_v40 }
 0x143   :  { %v404_v44 = vsel %vm396_vm7, %v394_v36, %v402_v42  ;;  %v418_v15 = vrot.slane %v405_v43, %v671_v12  ;;  %v432_v45 = vrot.slane %v405_v43, %v662_v7  ;;  %v448_v47 = vrot.slane %v405_v43, %v690_v23 }
 0x144   :  { %v414_v48 = vrot.slane %v404_v44, %v671_v12  ;;  %v428_v39 = vrot.slane %v404_v44, %v662_v7  ;;  %v444_v41 = vrot.slane %v404_v44, %v690_v23  ;;  %v476_v52 = vrot.slane %v404_v44, %v697_v27 }
 0x145   :  { %v420_v50 = vmul.f32 %v418_v15, %v409_v53  ;;  %v434_v1 = vmul.f32 %v432_v45, %v423_v46  ;;  %v455_v2 = vpop.permute.xlu1 %454  ;;  %v450_v51 = vmul.f32 %v448_v47, %v439_v14  ;;  %v480_v55 = vrot.slane %v405_v43, %v697_v27 }
 0x146   :  { %v419_v17 = vmul.f32 %v414_v48, %v409_v53  ;;  %v433_v24 = vmul.f32 %v428_v39, %v423_v46  ;;  %v449_v5 = vmul.f32 %v444_v41, %v439_v14  ;;  %v460_v57 = vrot.slane %v404_v44, %v735_v49 }
 0x147   :  { %v436_v0 = vadd.f32 %v434_v1, %v420_v50  ;;  %v464_v12 = vrot.slane %v405_v43, %v735_v49  ;;  %v481_v19 = vmul.f32 %v476_v52, %v471_v13  ;;  %v492_v60 = vrot.slane %v404_v44, %v700_v28 }
 0x148   :  { %v435_v56 = vadd.f32 %v433_v24, %v419_v17  ;;  %v465_v58 = vmul.f32 %v460_v57, %v455_v2  ;;  %v482_v61 = vmul.f32 %v480_v55, %v471_v13  ;;  %v496_v27 = vrot.slane %v405_v43, %v700_v28 }
 0x149   :  { %v452_v7 = vadd.f32 %v450_v51, %v436_v0  ;;  %v466_v16 = vmul.f32 %v464_v12, %v455_v2  ;;  %v524_v54 = vrot.slane %v404_v44, %v716_v34  ;;  %v528_v63 = vrot.slane %v405_v43, %v716_v34 }
 0x14a   :  { %v451_v23 = vadd.f32 %v449_v5, %v435_v56  ;;  %v487_v59 = vpop.permute.xlu1 %486  ;;  %v508_v49 = vrot.slane %v404_v44, %v706_v30  ;;  %v512_v33 = vrot.slane %v405_v43, %v706_v30 }
 0x14b   :  { %v468_v38 = vadd.f32 %v466_v16, %v452_v7  ;;  %v497_v3 = vmul.f32 %v492_v60, %v487_v59  ;;  %v498_v8 = vmul.f32 %v496_v27, %v487_v59  ;;  %v529_v37 = vmul.f32 %v524_v54, %v519_v9 }
 0x14c   :  { %v467_v62 = vadd.f32 %v465_v58, %v451_v23  ;;  %v530_v28 = vmul.f32 %v528_v63, %v519_v9 }
 0x14d   :  { %v484_v6 = vadd.f32 %v482_v61, %v468_v38 }
 0x14e   :  { %v483_v4 = vadd.f32 %v481_v19, %v467_v62 }
 0x14f   :  { %v503_v10 = vpop.permute.xlu1 %502  ;;  %v500_v18 = vadd.f32 %v498_v8, %v484_v6 }
 0x150   :  { %v499_v11 = vadd.f32 %v497_v3, %v483_v4  ;;  %v513_v20 = vmul.f32 %v508_v49, %v503_v10  ;;  %v514_v21 = vmul.f32 %v512_v33, %v503_v10 }
 0x152   :  { %v515_v22 = vadd.f32 %v513_v20, %v499_v11  ;;  %v516_v25 = vadd.f32 %v514_v21, %v500_v18 }
 0x154   :  { %v535_v26 = vpop.permute.xlu1 %534  ;;  %v531_v34 = vadd.f32 %v529_v37, %v515_v22  ;;  %v532_v29 = vadd.f32 %v530_v28, %v516_v25 }
 0x156   :  { %v537_v53 = vadd.f32 %v535_v26, %v531_v34  ;;  %v538_v31 = vadd.f32 %v535_v26, %v532_v29 }
 0x158   :  { %543 = vrot.lane.b32.xlu0 %v538_v31, %s621_s2  ;;  %541 = vrot.lane.b32.xlu1 %v537_v53, %s621_s2 }
 0x1ca   :  { %v544_v30 = vpop.permute.xlu0 %543  ;;  %v542_v32 = vpop.permute.xlu1 %541 }
 0x1cb   :  { %v546_v35 = vsel %vm545_vm8, %v542_v32, %v544_v30 }
 0x1cc   :  { %548 = vst [vmem:[%s821_s4] sm:$0xff] %v546_v35 }

</bundles_post_ra>
